<compile_context>
chip_gen: v6e
topology: v6e:2x2x1
jax: 0.10.0
libtpu: 0.0.40
codegen_flags: <defaults>
</compile_context>

<pallas_src>
import jax
import jax.numpy as jnp
from jax.experimental import pallas as pl
from jax.experimental.pallas import tpu as pltpu

EPS = 1e-4
LANE = 128


def _make_fusion_kernel(k_nodes):
    def kernel(w_ref, *refs):
        # w_ref : SMEM (k_nodes + 1,) f32 = [relu(w_0), ..., relu(w_{K-1}), 1/(sum+eps)]
        # refs  : k_nodes VMEM input tiles (tile_m, 128) f32, then the output tile.
        x_refs = refs[:k_nodes]
        o_ref = refs[k_nodes]
        acc = x_refs[0][...] * w_ref[0]
        for k in range(1, k_nodes):              # static unroll over in_nodes
            acc = acc + x_refs[k][...] * w_ref[k]
        o_ref[...] = (acc * w_ref[k_nodes]).astype(o_ref.dtype)
    return kernel


def fast_normalized_fusion(xs, weight, *, tile_m=1024):
    """xs: list of K same-shaped NCHW float32 arrays. weight: (K,) float32."""
    k_nodes = len(xs)
    assert weight.shape == (k_nodes,)
    shape = xs[0].shape
    for xi in xs:
        assert xi.shape == shape

    total = 1
    for d in shape:
        total *= d

    # Flatten each input to a lane-dense (M, 128) layout. For contiguous inputs
    # this is a free view; non-divisible sizes get a one-off pad.
    pad = (-total) % LANE
    m = (total + pad) // LANE

    def to_flat(x):
        x1 = x.reshape(-1)
        if pad:
            x1 = jnp.pad(x1, (0, pad))
        return x1.reshape(m, LANE)

    xs_flat = [to_flat(xi) for xi in xs]

    # Biggest tile that fits (capped at the full row extent for small inputs).
    tile_m = min(tile_m, m)
    grid = (pl.cdiv(m, tile_m),)

    # Hoisted scalar work: relu(weight) and the normalization scale, done once.
    w_relu = jnp.maximum(weight.astype(jnp.float32), 0.0)
    inv = 1.0 / (jnp.sum(w_relu) + jnp.float32(EPS))
    w_packed = jnp.concatenate([w_relu, inv[None]])          # (K + 1,)

    x_spec = pl.BlockSpec((tile_m, LANE), lambda i: (i, 0))

    out_flat = pl.pallas_call(
        _make_fusion_kernel(k_nodes),
        out_shape=jax.ShapeDtypeStruct((m, LANE), jnp.float32),
        grid_spec=pltpu.PrefetchScalarGridSpec(
            num_scalar_prefetch=0,
            grid=grid,
            in_specs=[pl.BlockSpec(memory_space=pltpu.MemorySpace.SMEM)]
                     + [x_spec] * k_nodes,
            out_specs=pl.BlockSpec((tile_m, LANE), lambda i: (i, 0)),
        ),
        compiler_params=pltpu.CompilerParams(
            dimension_semantics=("parallel",)),   # megacore shard on v7x; no-op on v5e/v6e
    )(w_packed, *xs_flat)

    out = out_flat.reshape(-1)
    if pad:
        out = out[:total]
    return out.reshape(shape)


if __name__ == "__main__":
    # Module config: in_nodes inputs, each NCHW.
    in_nodes = 3
    N, C, H, W = 2, 4, 16, 16

    key = jax.random.PRNGKey(0)
    keys = jax.random.split(key, in_nodes)
    xs = [jax.random.normal(keys[i], (N, C, H, W), dtype=jnp.float32)
          for i in range(in_nodes)]

    # Deterministic parameter init matching nn.Parameter(torch.ones(in_nodes)).
    weight = jnp.ones((in_nodes,), dtype=jnp.float32)

    out = fast_normalized_fusion(xs, weight)
    out = jax.block_until_ready(out)

    # Reference check in plain JAX.
    w_relu = jnp.maximum(weight, 0.0)
    ref = sum(xi * wi for xi, wi in zip(xs, w_relu)) / (w_relu.sum() + EPS)
    assert out.shape == (N, C, H, W)
    assert jnp.allclose(out, ref, atol=1e-5, rtol=1e-5)

    print("KERNEL_OK")
</pallas_src>

<mosaic_0001>
module attributes {stable_mosaic.version = 11 : i64} {
  func.func @kernel(%arg0: i32, %arg1: memref<4xf32, #tpu.memory_space<smem>>, %arg2: memref<16x128xf32, #tpu.memory_space<vmem>>, %arg3: memref<16x128xf32, #tpu.memory_space<vmem>>, %arg4: memref<16x128xf32, #tpu.memory_space<vmem>>, %arg5: memref<16x128xf32, #tpu.memory_space<vmem>>) attributes {dimension_semantics = [#tpu.dimension_semantics<parallel>], iteration_bounds = array<i64: 1>, scalar_prefetch = 0 : i64, scratch_operands = 0 : i64, tpu.core_type = #tpu.core_type<tc>, window_params = [{transform_indices = @transform_0, window_bounds = array<i64: 4>}, {transform_indices = @transform_1, window_bounds = array<i64: 16, 128>}, {transform_indices = @transform_2, window_bounds = array<i64: 16, 128>}, {transform_indices = @transform_3, window_bounds = array<i64: 16, 128>}, {transform_indices = @transform_4, window_bounds = array<i64: 16, 128>}]} {
    %c0 = arith.constant 0 : index
    %c0_0 = arith.constant 0 : index
    %0 = vector.load %arg2[%c0, %c0_0] : memref<16x128xf32, #tpu.memory_space<vmem>>, vector<16x128xf32>
    %c0_1 = arith.constant 0 : index
    %1 = memref.load %arg1[%c0_1] : memref<4xf32, #tpu.memory_space<smem>>
    %2 = vector.broadcast %1 : f32 to vector<16x128xf32>
    %3 = arith.mulf %0, %2 : vector<16x128xf32>
    %c0_2 = arith.constant 0 : index
    %c0_3 = arith.constant 0 : index
    %4 = vector.load %arg3[%c0_2, %c0_3] : memref<16x128xf32, #tpu.memory_space<vmem>>, vector<16x128xf32>
    %c1 = arith.constant 1 : index
    %5 = memref.load %arg1[%c1] : memref<4xf32, #tpu.memory_space<smem>>
    %6 = vector.broadcast %5 : f32 to vector<16x128xf32>
    %7 = arith.mulf %4, %6 : vector<16x128xf32>
    %8 = arith.addf %3, %7 : vector<16x128xf32>
    %c0_4 = arith.constant 0 : index
    %c0_5 = arith.constant 0 : index
    %9 = vector.load %arg4[%c0_4, %c0_5] : memref<16x128xf32, #tpu.memory_space<vmem>>, vector<16x128xf32>
    %c2 = arith.constant 2 : index
    %10 = memref.load %arg1[%c2] : memref<4xf32, #tpu.memory_space<smem>>
    %11 = vector.broadcast %10 : f32 to vector<16x128xf32>
    %12 = arith.mulf %9, %11 : vector<16x128xf32>
    %13 = arith.addf %8, %12 : vector<16x128xf32>
    %c3 = arith.constant 3 : index
    %14 = memref.load %arg1[%c3] : memref<4xf32, #tpu.memory_space<smem>>
    %15 = vector.broadcast %14 : f32 to vector<16x128xf32>
    %16 = arith.mulf %13, %15 : vector<16x128xf32>
    %c0_6 = arith.constant 0 : index
    %c0_7 = arith.constant 0 : index
    %17 = vector.load %arg5[%c0_6, %c0_7] : memref<16x128xf32, #tpu.memory_space<vmem>>, vector<16x128xf32>
    tpu.vector_store %arg5[%c0_6, %c0_7], %16 {strides = array<i32>} : memref<16x128xf32, #tpu.memory_space<vmem>>, vector<16x128xf32>,
    return
  }
  func.func @transform_0(%arg0: i32) -> i32 {
    %c0_i32 = arith.constant 0 : i32
    %c0_i32_0 = arith.constant 0 : i32
    return %c0_i32 : i32
  }
  func.func @transform_1(%arg0: i32) -> (i32, i32) {
    %c0_i32 = arith.constant 0 : i32
    %c0_i32_0 = arith.constant 0 : i32
    return %arg0, %c0_i32 : i32, i32
  }
  func.func @transform_2(%arg0: i32) -> (i32, i32) {
    %c0_i32 = arith.constant 0 : i32
    %c0_i32_0 = arith.constant 0 : i32
    return %arg0, %c0_i32 : i32, i32
  }
  func.func @transform_3(%arg0: i32) -> (i32, i32) {
    %c0_i32 = arith.constant 0 : i32
    %c0_i32_0 = arith.constant 0 : i32
    return %arg0, %c0_i32 : i32, i32
  }
  func.func @transform_4(%arg0: i32) -> (i32, i32) {
    %c0_i32 = arith.constant 0 : i32
    %c0_i32_0 = arith.constant 0 : i32
    return %arg0, %c0_i32 : i32, i32
  }
}

</mosaic_0001>

<bundles_post_ra>
// kernel: tpu_custom_call.1
= control target key start
LH: loop header
LB: loop body
LE: loop exit
PB: predicated region body
PF: predicated region fallthrough
CT: control target
= control target key end

     0   :  { %9 = vsyncpa [#allocation5], 0  ;;  %s282_s0 = inlined_call_operand.hbm [shape: f32[4], index: 0, kind: input, shape index: {}]   ;;  %s283_s1 = inlined_call_operand.hbm [shape: f32[16,128], index: 1, kind: input, shape index: {}]   ;;  %s284_s2 = inlined_call_operand.hbm [shape: f32[16,128], index: 2, kind: input, shape index: {}]   ;;  %s285_s3 = inlined_call_operand.hbm [shape: f32[16,128], index: 3, kind: input, shape index: {}]   ;;  %s286_s4 = inlined_call_operand.hbm [shape: f32[16,128], index: 4, kind: output, shape index: {}]  }
   0x1   :  { %10 = vsyncpa [#allocation3], 0 }
   0x2   :  { %11 = vsyncpa [#allocation8], 0 }
   0x3   :  { %12 = vsyncpa [#allocation4], 0  ;;  %s223_s15 = smov [#allocation7]   ;;  %s224_s17 = smov [#allocation6]  }
   0x4   :  { %s38_s16 = sshll.u32 %s223_s15, 4  ;;  %s26_s18 = sshll.u32 %s224_s17, 4  ;;  %s39_s16 = int_to_ptr.vmem [resolvable:$true] %s38_s16  ;;  %s27_s18 = int_to_ptr.vmem [resolvable:$true] %s26_s18 }
   0x5   :  { %s135_s19 = scalar_lea.vmem %s39_s16, 256  ;;  %p140_p1 = scmp.lt.s32.totalorder %s39_s16, %s39_s16 }
   0x6   :  { %p136_p0 = scmp.ne.s32.totalorder %s39_s16, %s135_s19  ;;  %p141_p2 = scmp.lt.s32.totalorder %s135_s19, %s135_s19 }
   0x8   :  { %p142_p3 = por %p141_p2, %p140_p1 }
   0xa   :  { %p143_p4 = pnand %p142_p3, %p136_p0 }
   0xc   :  { %146 = shalt.err (!%p143_p4)
}
   0xd   :  { %s225_s20 = smov 128   ;;  %s226_s21 = smov 8  }
   0xe   :  { %44 = dma.hbm_to_vmem [thread:$0]  %s284_s2, 256, %s39_s16, [#allocation8], %s225_s20, %s225_s20, %s226_s21  }
   0xf   :  { %s227_s24 = smov [#allocation2]   ;;  %s163_s27 = scalar_lea.vmem %s27_s18, 256 }
  0x10   :  { %20 = dma.hbm_to_smem %s282_s0, 16, %s227_s24, [#allocation5]  }
  0x11   :  { %p164_p5 = scmp.ne.s32.totalorder %s27_s18, %s163_s27  ;;  %p168_p6 = scmp.lt.s32.totalorder %s27_s18, %s27_s18 }
  0x12   :  { %p169_p7 = scmp.lt.s32.totalorder %s163_s27, %s163_s27 }
  0x14   :  { %p170_p8 = por %p169_p7, %p168_p6 }
  0x16   :  { %p171_p9 = pnand %p170_p8, %p164_p5 }
  0x18   :  { %174 = shalt.err (!%p171_p9)
}
  0x19   :  { %32 = dma.hbm_to_vmem [thread:$0]  %s283_s1, 256, %s27_s18, [#allocation3], %s225_s20, %s225_s20, %s226_s21  }
  0x1a   :  { %s228_s2 = smov [#allocation9]  }
  0x1b   :  { %s50_s30 = sshll.u32 %s228_s2, 4  ;;  %s51_s30 = int_to_ptr.vmem [resolvable:$true] %s50_s30 }
  0x1c   :  { %s183_s5 = scalar_lea.vmem %s51_s30, 256  ;;  %p188_p11 = scmp.lt.s32.totalorder %s51_s30, %s51_s30 }
  0x1d   :  { %p184_p10 = scmp.ne.s32.totalorder %s51_s30, %s183_s5  ;;  %p189_p12 = scmp.lt.s32.totalorder %s183_s5, %s183_s5 }
  0x1f   :  { %p190_p13 = por %p189_p12, %p188_p11 }
  0x21   :  { %p191_p0 = pnand %p190_p13, %p184_p10 }
  0x23   :  { %194 = shalt.err (!%p191_p0)
}
  0x24   :  { %56 = dma.hbm_to_vmem [thread:$0]  %s285_s3, 256, %s51_s30, [#allocation8], %s225_s20, %s225_s20, %s226_s21  }
  0x25   :  { %215 = dma.done.wait [#allocation5], 16  }
  0x26   :  { %216 = vsyncadd [#allocation5], 4294967280 }
  0x27   :  { %217 = dma.done.wait [#allocation3], 256  }
  0x28   :  { %218 = vsyncadd [#allocation3], 4294967040 }
  0x29   :  { %219 = dma.done.wait [#allocation8], 512  }
  0x2a   :  { %220 = vsyncadd [#allocation8], 4294966784 }
  0x2b   :  { %69 = sfence }
  0x2c   :  { %s72_s1 = sld [smem:[#allocation2]]  ;;  %v70_v0 = vld [vmem:[#allocation6] sm:$0xff]  ;;  %v71_v1 = vld [vmem:[#allocation6 + $0x8] sm:$0xff]  ;;  %v76_v2 = vld [vmem:[#allocation7] sm:$0xff]  ;;  %s229_s3 = smov [#allocation10]  }
  0x2d   :  { %s117_s7 = sld [smem:[#allocation2 + $0x1]]  ;;  %v77_v3 = vld [vmem:[#allocation7 + $0x8] sm:$0xff]  ;;  %v84_v5 = vld [vmem:[#allocation9] sm:$0xff]  ;;  %v85_v6 = vld [vmem:[#allocation9 + $0x8] sm:$0xff]  ;;  %s103_s10 = sshll.u32 %s229_s3, 4  ;;  %s104_s10 = int_to_ptr.vmem [resolvable:$true] %s103_s10 }
  0x2e   :  { %s118_s8 = sld [smem:[#allocation2 + $0x2]]  ;;  %s195_s11 = scalar_lea.vmem %s104_s10, 256 }
  0x2f   :  { %s119_s9 = sld [smem:[#allocation2 + $0x3]]  ;;  %p196_p1 = scmp.ne.s32.totalorder %s104_s10, %s195_s11 }
  0x30   :  { %p200_p2 = scmp.lt.s32.totalorder %s104_s10, %s104_s10  ;;  %p201_p3 = scmp.lt.s32.totalorder %s195_s11, %s195_s11 }
  0x32   :  { %v73_v4 = vstv %s72_s1  ;;  %p202_p4 = por %p201_p3, %p200_p2 }
  0x33   :  { %v74_v7 = vmul.f32 %v73_v4, %v70_v0  ;;  %v79_v8 = vstv %s117_s7  ;;  %v75_v9 = vmul.f32 %v73_v4, %v71_v1 }
  0x34   :  { %v80_v10 = vmul.f32 %v79_v8, %v76_v2  ;;  %v87_v11 = vstv %s118_s8  ;;  %v81_v12 = vmul.f32 %v79_v8, %v77_v3  ;;  %p203_p5 = pnand %p202_p4, %p196_p1 }
  0x35   :  { %v88_v13 = vmul.f32 %v87_v11, %v84_v5  ;;  %v89_v14 = vmul.f32 %v87_v11, %v85_v6  ;;  %v93_v17 = vstv %s119_s9 }
  0x36   :  { %v82_v15 = vadd.f32 %v80_v10, %v74_v7  ;;  %v83_v16 = vadd.f32 %v81_v12, %v75_v9 }
  0x38   :  { %v90_v18 = vadd.f32 %v88_v13, %v82_v15  ;;  %v91_v19 = vadd.f32 %v89_v14, %v83_v16 }
  0x3a   :  { %v94_v20 = vmul.f32 %v93_v17, %v90_v18  ;;  %v95_v21 = vmul.f32 %v93_v17, %v91_v19 }
  0x3c   :  { %96 = vst [vmem:[#allocation10] sm:$0xff] %v94_v20  ;;  %97 = vst [vmem:[#allocation10 + $0x8] sm:$0xff] %v95_v21 }
  0x3d   :  { %206 = shalt.err (!%p203_p5)
}
  0x3e   :  { %109 = dma.vmem_to_hbm [thread:$0]  %s104_s10, 256, %s286_s4, [#allocation4], %s225_s20, %s225_s20, %s226_s21  }
  0x3f   :  { %221 = dma.done.wait [#allocation4], 256  }
  0x40   :  { %222 = vsyncadd [#allocation4], 4294967040 }
  0x41   :  { %113 = vsyncpa [#allocation3], 1 }
  0x42   :  { %114 = vsyncpa [#allocation8], 1 }
  0x43   :  { %115 = vsyncpa [#allocation4], 1 }
  0x44   :  { %116 = vsyncpa [#allocation5], 1 }

</bundles_post_ra>
